<compile_context>
chip_gen: v7x
topology: tpu7x:2x2x1
jax: 0.10.0
libtpu: 0.0.40
codegen_flags: <defaults>
</compile_context>

<pallas_src>
import functools

import jax
import jax.numpy as jnp
from jax import lax
from jax.experimental import pallas as pl
from jax.experimental.pallas import tpu as pltpu


def _round_up(x, m):
    return (x + m - 1) // m * m


def _gru_kernel(t_total, mask_tail,
                x_ref, wih_ref, whh_ref, bias_ref, h_out_ref, h_ref):
    """One block of GRU time steps for one batch shard, (H, B) layout.

    x_ref    : (t_block, H, B_blk)  embedded inputs, time-major; batch on the
               128-lane axis so per-step slices x_ref[tt] are free,
               lane-dense (H, B) leading-axis views.
    wih_ref  : (3H, H)   W_ih^T, gate-major rows [r; z; n]
    whh_ref  : (3H, H)   W_hh^T, gate-major rows [r; z; n]
    bias_ref : (4, H, 1) [b_ir+b_hr, b_iz+b_hz, b_in, b_hn]
    h_out_ref: (H, B_blk) final hidden state (written on last time block)
    h_ref    : (H, B_blk) VMEM scratch: hidden state carried across blocks
    """
    t_idx = pl.program_id(1)
    H, B = h_ref.shape
    t_blk = x_ref.shape[0]

    @pl.when(t_idx == 0)
    def _():
        h_ref[...] = jnp.zeros_like(h_ref)

    # Grid-invariant weights (loaded once per block).
    w_ih = wih_ref[...]
    w_hh = whh_ref[...]
    # Hoist the lane-broadcast of the biases out of the step loop.
    b_r = jnp.broadcast_to(bias_ref[0], (H, B))
    b_z = jnp.broadcast_to(bias_ref[1], (H, B))
    b_in = jnp.broadcast_to(bias_ref[2], (H, B))
    b_hn = jnp.broadcast_to(bias_ref[3], (H, B))

    def step(tt, h):
        x_t = x_ref[tt]                                   # (H, B) free view
        # Single stacked dot per operand; f32 accumulation on the MXU.
        gi = jnp.dot(w_ih, x_t, preferred_element_type=jnp.float32)
        gh = jnp.dot(w_hh, h.astype(w_hh.dtype),
                     preferred_element_type=jnp.float32)
        r = jax.nn.sigmoid(gi[:H] + gh[:H] + b_r)
        z = jax.nn.sigmoid(gi[H:2 * H] + gh[H:2 * H] + b_z)
        n = jnp.tanh(gi[2 * H:] + b_in + r * (gh[2 * H:] + b_hn))
        h_new = (1.0 - z) * n + z * h
        if mask_tail:
            # Padded tail time steps must not update h.
            valid = (t_idx * t_blk + tt) < t_total
            h_new = jnp.where(valid, h_new, h)
        return h_new

    unroll = True if t_blk <= 16 else 8
    h_fin = lax.fori_loop(0, t_blk, step, h_ref[...], unroll=unroll)
    h_ref[...] = h_fin

    @pl.when(t_idx == pl.num_programs(1) - 1)
    def _():
        h_out_ref[...] = h_fin


def rnn_classifier_forward(token_ids, params, *, pad_idx=0, t_block=64,
                           matmul_dtype=jnp.float32):
    """token_ids: (B, T) int32. Returns logits (B, output_dim) float32.

    matmul_dtype: set to jnp.bfloat16 on v6e/v7x to halve x/W HBM + VMEM
    traffic (hidden state and accumulation stay f32).
    """
    emb = params["embedding"]          # (V, H), padding row already zeroed
    w_ih = params["w_ih"]              # (H, 3H), gate order [r, z, n]
    w_hh = params["w_hh"]              # (H, 3H)
    b_ih = params["b_ih"]              # (1, 3H)
    b_hh = params["b_hh"]              # (1, 3H)
    w_c = params["w_c"]                # (H, O)
    b_c = params["b_c"]                # (1, O)

    B, T = token_ids.shape
    H = emb.shape[1]

    # --- batch padding / sharding.  Batch rides the 128-lane axis; keep
    #     b_block <= 128 so B >= 256 yields >= 2 "parallel" blocks (both TCs
    #     on v7x). -------------------------------------------------------
    b_block = min(128, _round_up(B, 8))
    B_pad = _round_up(B, b_block)
    if B_pad != B:
        token_ids = jnp.pad(token_ids, ((0, B_pad - B), (0, 0)),
                            constant_values=pad_idx)

    # --- time blocking: pad T to a multiple of t_block, mask the tail -----
    t_block = max(1, min(t_block, _round_up(T, 8)))
    T_pad = _round_up(T, t_block)
    num_t_blocks = T_pad // t_block
    mask_tail = T_pad != T

    # --- embedding gather (XLA), laid out time-major with batch on lanes --
    x = jnp.take(emb, token_ids, axis=0)       # (B_pad, T, H)
    x = jnp.transpose(x, (1, 2, 0))            # (T, H, B_pad)
    if T_pad != T:
        x = jnp.pad(x, ((0, T_pad - T), (0, 0), (0, 0)))
    x = x.astype(matmul_dtype)

    # Gate-major transposed weights, stacked along sublanes: (3H, H).
    w_ih_t = w_ih.T.astype(matmul_dtype)       # rows [r; z; n]
    w_hh_t = w_hh.T.astype(matmul_dtype)

    # Biases as (4, H, 1) column vectors: r/z hidden biases folded in;
    # b_in / b_hn kept separate because b_hn sits inside r * (Whn h + b_hn).
    b_r = (b_ih[:, :H] + b_hh[:, :H]).reshape(H, 1)
    b_z = (b_ih[:, H:2 * H] + b_hh[:, H:2 * H]).reshape(H, 1)
    b_in = b_ih[:, 2 * H:].reshape(H, 1)
    b_hn = b_hh[:, 2 * H:].reshape(H, 1)
    bias = jnp.stack([b_r, b_z, b_in, b_hn], axis=0).astype(jnp.float32)

    grid = (B_pad // b_block, num_t_blocks)
    kernel = functools.partial(_gru_kernel, T, mask_tail)

    h_last = pl.pallas_call(
        kernel,
        out_shape=jax.ShapeDtypeStruct((H, B_pad), jnp.float32),
        grid_spec=pltpu.PrefetchScalarGridSpec(
            num_scalar_prefetch=0,
            grid=grid,
            in_specs=[
                pl.BlockSpec((t_block, H, b_block), lambda b, t: (t, 0, b)),
                # Grid-invariant weights/biases (for very large H on v7x,
                # single-buffering these reclaims VMEM).
                pl.BlockSpec((3 * H, H), lambda b, t: (0, 0)),
                pl.BlockSpec((3 * H, H), lambda b, t: (0, 0)),
                pl.BlockSpec((4, H, 1), lambda b, t: (0, 0, 0)),
            ],
            out_specs=pl.BlockSpec((H, b_block), lambda b, t: (0, b)),
            scratch_shapes=[pltpu.VMEM((H, b_block), jnp.float32)],
        ),
        compiler_params=pltpu.CompilerParams(
            dimension_semantics=("parallel", "arbitrary"),
            vmem_limit_bytes=48 * 1024 * 1024,   # stays under v7x's 64 MiB
        ),
    )(x, w_ih_t, w_hh_t, bias)

    # Tiny (B, H) x (H, O) classifier (O may be 1) left to XLA to avoid a
    # lane-width-1 masked store inside the kernel.
    state = h_last[:, :B].T                    # (B, H)
    return jnp.dot(state, w_c) + b_c


def init_params(key, vocab_size, hidden, output_dim, pad_idx):
    ks = jax.random.split(key, 7)
    scale = 1.0 / jnp.sqrt(hidden)
    embedding = jax.random.normal(ks[0], (vocab_size, hidden), jnp.float32) * 0.1
    # padding_idx row is zero, as in nn.Embedding(padding_idx=...)
    embedding = embedding.at[pad_idx].set(0.0)
    # PyTorch stores weight_ih_l0 as (3H, H); we store the transpose (H, 3H),
    # gate order [r, z, n] concatenated along the last axis.
    w_ih = jax.random.uniform(ks[1], (hidden, 3 * hidden), jnp.float32, -scale, scale)
    w_hh = jax.random.uniform(ks[2], (hidden, 3 * hidden), jnp.float32, -scale, scale)
    b_ih = jax.random.uniform(ks[3], (1, 3 * hidden), jnp.float32, -scale, scale)
    b_hh = jax.random.uniform(ks[4], (1, 3 * hidden), jnp.float32, -scale, scale)
    # nn.Linear(size, output_dim): weight (O, H) in PyTorch; stored transposed.
    w_c = jax.random.uniform(ks[5], (hidden, output_dim), jnp.float32, -scale, scale)
    b_c = jax.random.uniform(ks[6], (1, output_dim), jnp.float32, -scale, scale)
    return {
        "embedding": embedding,
        "w_ih": w_ih, "w_hh": w_hh, "b_ih": b_ih, "b_hh": b_hh,
        "w_c": w_c, "b_c": b_c,
    }


if __name__ == "__main__":
    # Small, deterministic example shapes:
    B, T, H = 2, 8, 32          # batch, sequence length, hidden/embed size
    VOCAB = 16                  # len(vocab)
    PAD_IDX = 1                 # vocab.stoi['<pad>'] (torchtext convention)
    OUTPUT_DIM = 1

    key = jax.random.PRNGKey(0)
    k_param, k_tok = jax.random.split(key)

    params = init_params(k_param, VOCAB, H, OUTPUT_DIM, PAD_IDX)
    token_ids = jax.random.randint(k_tok, (B, T), 0, VOCAB, dtype=jnp.int32)

    # t_block=3 with T=8 -> three time blocks and a padded/masked tail step,
    # exercising both the hidden-state carry across grid iterations and the
    # tail-masking path.
    logits = rnn_classifier_forward(token_ids, params, pad_idx=PAD_IDX,
                                    t_block=3)
    logits = jax.block_until_ready(logits)

    # Pure-JAX reference (same math as PyTorch nn.GRU) to sanity-check.
    # NOTE: like the PyTorch module (no pack_padded_sequence), <pad> tokens
    # still update the hidden state.
    def ref_forward(ids, p):
        x = jnp.take(p["embedding"], ids, axis=0)            # (B, T, H)
        h = jnp.zeros((ids.shape[0], H), jnp.float32)
        for t in range(ids.shape[1]):
            x_t = x[:, t, :]
            gi = x_t @ p["w_ih"] + p["b_ih"]
            gh = h @ p["w_hh"] + p["b_hh"]
            i_r, i_z, i_n = gi[:, :H], gi[:, H:2 * H], gi[:, 2 * H:]
            h_r, h_z, h_n = gh[:, :H], gh[:, H:2 * H], gh[:, 2 * H:]
            r = jax.nn.sigmoid(i_r + h_r)
            z = jax.nn.sigmoid(i_z + h_z)
            n = jnp.tanh(i_n + r * h_n)
            h = (1.0 - z) * n + z * h
        return h @ p["w_c"] + p["b_c"]

    ref = ref_forward(token_ids, params)
    assert logits.shape == (B, OUTPUT_DIM)
    assert jnp.allclose(logits, ref, atol=5e-5, rtol=5e-5), (logits, ref)

    print("KERNEL_OK")
</pallas_src>

<mosaic_0001>
module attributes {stable_mosaic.version = 11 : i64} {
  func.func @_gru_kernel(%arg0: i32, %arg1: i32, %arg2: memref<3x32x8xf32, #tpu.memory_space<vmem>>, %arg3: memref<96x32xf32, #tpu.memory_space<vmem>>, %arg4: memref<96x32xf32, #tpu.memory_space<vmem>>, %arg5: memref<4x32x1xf32, #tpu.memory_space<vmem>>, %arg6: memref<32x8xf32, #tpu.memory_space<vmem>>, %arg7: memref<32x8xf32, #tpu.memory_space<vmem>>) attributes {dimension_semantics = [#tpu.dimension_semantics<parallel>, #tpu.dimension_semantics<arbitrary>], iteration_bounds = array<i64: 1, 3>, scalar_prefetch = 0 : i64, scratch_operands = 1 : i64, tpu.core_type = #tpu.core_type<tc>, window_params = [{transform_indices = @transform_0, window_bounds = array<i64: 3, 32, 8>}, {pipeline_mode = #tpu.pipeline_mode<synchronous>, transform_indices = @transform_1, window_bounds = array<i64: 96, 32>}, {pipeline_mode = #tpu.pipeline_mode<synchronous>, transform_indices = @transform_2, window_bounds = array<i64: 96, 32>}, {pipeline_mode = #tpu.pipeline_mode<synchronous>, transform_indices = @transform_3, window_bounds = array<i64: 4, 32, 1>}, {transform_indices = @transform_4, window_bounds = array<i64: 32, 8>}]} {
    %c0_i32 = arith.constant 0 : i32
    %0 = arith.cmpi eq, %arg1, %c0_i32 : i32
    %1 = arith.extui %0 : i1 to i32
    %c0_i32_0 = arith.constant 0 : i32
    %2 = arith.cmpi ne, %1, %c0_i32_0 : i32
    scf.if %2 {
      %cst_45 = arith.constant 0.000000e+00 : f32
      %143 = vector.broadcast %cst_45 : f32 to vector<32x8xf32>
      %c0_46 = arith.constant 0 : index
      %c0_47 = arith.constant 0 : index
      %144 = vector.load %arg7[%c0_46, %c0_47] : memref<32x8xf32, #tpu.memory_space<vmem>>, vector<32x8xf32>
      tpu.vector_store %arg7[%c0_46, %c0_47], %143 {strides = array<i32>} : memref<32x8xf32, #tpu.memory_space<vmem>>, vector<32x8xf32>,
    } else {
    }
    %c0 = arith.constant 0 : index
    %c0_1 = arith.constant 0 : index
    %3 = vector.load %arg3[%c0, %c0_1] : memref<96x32xf32, #tpu.memory_space<vmem>>, vector<96x32xf32>
    %c0_2 = arith.constant 0 : index
    %c0_3 = arith.constant 0 : index
    %4 = vector.load %arg4[%c0_2, %c0_3] : memref<96x32xf32, #tpu.memory_space<vmem>>, vector<96x32xf32>
    %c0_4 = arith.constant 0 : index
    %c0_5 = arith.constant 0 : index
    %c0_6 = arith.constant 0 : index
    %5 = vector.load %arg5[%c0_4, %c0_5, %c0_6] : memref<4x32x1xf32, #tpu.memory_space<vmem>>, vector<1x32x1xf32>
    %6 = vector.shape_cast %5 : vector<1x32x1xf32> to vector<32x1xf32>
    %7 = vector.shape_cast %6 : vector<32x1xf32> to vector<32x1xf32>
    %8 = vector.broadcast %7 : vector<32x1xf32> to vector<32x8xf32>
    %c1 = arith.constant 1 : index
    %c0_7 = arith.constant 0 : index
    %c0_8 = arith.constant 0 : index
    %9 = vector.load %arg5[%c1, %c0_7, %c0_8] : memref<4x32x1xf32, #tpu.memory_space<vmem>>, vector<1x32x1xf32>
    %10 = vector.shape_cast %9 : vector<1x32x1xf32> to vector<32x1xf32>
    %11 = vector.shape_cast %10 : vector<32x1xf32> to vector<32x1xf32>
    %12 = vector.broadcast %11 : vector<32x1xf32> to vector<32x8xf32>
    %c2 = arith.constant 2 : index
    %c0_9 = arith.constant 0 : index
    %c0_10 = arith.constant 0 : index
    %13 = vector.load %arg5[%c2, %c0_9, %c0_10] : memref<4x32x1xf32, #tpu.memory_space<vmem>>, vector<1x32x1xf32>
    %14 = vector.shape_cast %13 : vector<1x32x1xf32> to vector<32x1xf32>
    %15 = vector.shape_cast %14 : vector<32x1xf32> to vector<32x1xf32>
    %16 = vector.broadcast %15 : vector<32x1xf32> to vector<32x8xf32>
    %c3 = arith.constant 3 : index
    %c0_11 = arith.constant 0 : index
    %c0_12 = arith.constant 0 : index
    %17 = vector.load %arg5[%c3, %c0_11, %c0_12] : memref<4x32x1xf32, #tpu.memory_space<vmem>>, vector<1x32x1xf32>
    %18 = vector.shape_cast %17 : vector<1x32x1xf32> to vector<32x1xf32>
    %19 = vector.shape_cast %18 : vector<32x1xf32> to vector<32x1xf32>
    %20 = vector.broadcast %19 : vector<32x1xf32> to vector<32x8xf32>
    %c0_13 = arith.constant 0 : index
    %c0_14 = arith.constant 0 : index
    %21 = vector.load %arg7[%c0_13, %c0_14] : memref<32x8xf32, #tpu.memory_space<vmem>>, vector<32x8xf32>
    %c0_i32_15 = arith.constant 0 : i32
    %22 = arith.index_cast %c0_i32_15 : i32 to index
    %c0_16 = arith.constant 0 : index
    %c0_17 = arith.constant 0 : index
    %23 = vector.load %arg2[%22, %c0_16, %c0_17] : memref<3x32x8xf32, #tpu.memory_space<vmem>>, vector<1x32x8xf32>
    %24 = vector.shape_cast %23 : vector<1x32x8xf32> to vector<32x8xf32>
    %cst = arith.constant dense<0.000000e+00> : vector<96x8xf32>
    %25 = tpu.matmul %3, %24, %cst {dimension_numbers = #tpu.dot_dimension_numbers<[1], [0], [0], [1], [0, 0, 1, 1], [], []>} : vector<96x32xf32>, vector<32x8xf32>, vector<96x8xf32> -> vector<96x8xf32>
    %cst_18 = arith.constant dense<0.000000e+00> : vector<96x8xf32>
    %26 = tpu.matmul %4, %21, %cst_18 {dimension_numbers = #tpu.dot_dimension_numbers<[1], [0], [0], [1], [0, 0, 1, 1], [], []>} : vector<96x32xf32>, vector<32x8xf32>, vector<96x8xf32> -> vector<96x8xf32>
    %27 = vector.extract_strided_slice %25 {offsets = [0, 0], sizes = [32, 8], strides = [1, 1]} : vector<96x8xf32> to vector<32x8xf32>
    %28 = vector.extract_strided_slice %26 {offsets = [0, 0], sizes = [32, 8], strides = [1, 1]} : vector<96x8xf32> to vector<32x8xf32>
    %29 = arith.addf %27, %28 : vector<32x8xf32>
    %30 = arith.addf %29, %8 : vector<32x8xf32>
    %31 = arith.negf %30 : vector<32x8xf32>
    %32 = math.exp %31 : vector<32x8xf32>
    %cst_19 = arith.constant 1.000000e+00 : f32
    %33 = vector.broadcast %cst_19 : f32 to vector<32x8xf32>
    %34 = arith.addf %33, %32 : vector<32x8xf32>
    %35 = arith.divf %33, %34 : vector<32x8xf32>
    %36 = vector.extract_strided_slice %25 {offsets = [32, 0], sizes = [32, 8], strides = [1, 1]} : vector<96x8xf32> to vector<32x8xf32>
    %37 = vector.extract_strided_slice %26 {offsets = [32, 0], sizes = [32, 8], strides = [1, 1]} : vector<96x8xf32> to vector<32x8xf32>
    %38 = arith.addf %36, %37 : vector<32x8xf32>
    %39 = arith.addf %38, %12 : vector<32x8xf32>
    %40 = arith.negf %39 : vector<32x8xf32>
    %41 = math.exp %40 : vector<32x8xf32>
    %cst_20 = arith.constant 1.000000e+00 : f32
    %42 = vector.broadcast %cst_20 : f32 to vector<32x8xf32>
    %43 = arith.addf %42, %41 : vector<32x8xf32>
    %44 = arith.divf %42, %43 : vector<32x8xf32>
    %45 = vector.extract_strided_slice %25 {offsets = [64, 0], sizes = [32, 8], strides = [1, 1]} : vector<96x8xf32> to vector<32x8xf32>
    %46 = arith.addf %45, %16 : vector<32x8xf32>
    %47 = vector.extract_strided_slice %26 {offsets = [64, 0], sizes = [32, 8], strides = [1, 1]} : vector<96x8xf32> to vector<32x8xf32>
    %48 = arith.addf %47, %20 : vector<32x8xf32>
    %49 = arith.mulf %35, %48 : vector<32x8xf32>
    %50 = arith.addf %46, %49 : vector<32x8xf32>
    %51 = math.tanh %50 : vector<32x8xf32>
    %cst_21 = arith.constant 1.000000e+00 : f32
    %52 = vector.broadcast %cst_21 : f32 to vector<32x8xf32>
    %53 = arith.subf %52, %44 : vector<32x8xf32>
    %54 = arith.mulf %53, %51 : vector<32x8xf32>
    %55 = arith.mulf %44, %21 : vector<32x8xf32>
    %56 = arith.addf %54, %55 : vector<32x8xf32>
    %c3_i32 = arith.constant 3 : i32
    %57 = arith.muli %arg1, %c3_i32 : i32
    %58 = arith.addi %57, %c0_i32_15 : i32
    %c8_i32 = arith.constant 8 : i32
    %59 = arith.cmpi slt, %58, %c8_i32 : i32
    %60 = arith.select %59, %56, %21 : vector<32x8xf32>
    %c1_i32 = arith.constant 1 : i32
    %61 = arith.index_cast %c1_i32 : i32 to index
    %c0_22 = arith.constant 0 : index
    %c0_23 = arith.constant 0 : index
    %62 = vector.load %arg2[%61, %c0_22, %c0_23] : memref<3x32x8xf32, #tpu.memory_space<vmem>>, vector<1x32x8xf32>
    %63 = vector.shape_cast %62 : vector<1x32x8xf32> to vector<32x8xf32>
    %cst_24 = arith.constant dense<0.000000e+00> : vector<96x8xf32>
    %64 = tpu.matmul %3, %63, %cst_24 {dimension_numbers = #tpu.dot_dimension_numbers<[1], [0], [0], [1], [0, 0, 1, 1], [], []>} : vector<96x32xf32>, vector<32x8xf32>, vector<96x8xf32> -> vector<96x8xf32>
    %cst_25 = arith.constant dense<0.000000e+00> : vector<96x8xf32>
    %65 = tpu.matmul %4, %60, %cst_25 {dimension_numbers = #tpu.dot_dimension_numbers<[1], [0], [0], [1], [0, 0, 1, 1], [], []>} : vector<96x32xf32>, vector<32x8xf32>, vector<96x8xf32> -> vector<96x8xf32>
    %66 = vector.extract_strided_slice %64 {offsets = [0, 0], sizes = [32, 8], strides = [1, 1]} : vector<96x8xf32> to vector<32x8xf32>
    %67 = vector.extract_strided_slice %65 {offsets = [0, 0], sizes = [32, 8], strides = [1, 1]} : vector<96x8xf32> to vector<32x8xf32>
    %68 = arith.addf %66, %67 : vector<32x8xf32>
    %69 = arith.addf %68, %8 : vector<32x8xf32>
    %70 = arith.negf %69 : vector<32x8xf32>
    %71 = math.exp %70 : vector<32x8xf32>
    %cst_26 = arith.constant 1.000000e+00 : f32
    %72 = vector.broadcast %cst_26 : f32 to vector<32x8xf32>
    %73 = arith.addf %72, %71 : vector<32x8xf32>
    %74 = arith.divf %72, %73 : vector<32x8xf32>
    %75 = vector.extract_strided_slice %64 {offsets = [32, 0], sizes = [32, 8], strides = [1, 1]} : vector<96x8xf32> to vector<32x8xf32>
    %76 = vector.extract_strided_slice %65 {offsets = [32, 0], sizes = [32, 8], strides = [1, 1]} : vector<96x8xf32> to vector<32x8xf32>
    %77 = arith.addf %75, %76 : vector<32x8xf32>
    %78 = arith.addf %77, %12 : vector<32x8xf32>
    %79 = arith.negf %78 : vector<32x8xf32>
    %80 = math.exp %79 : vector<32x8xf32>
    %cst_27 = arith.constant 1.000000e+00 : f32
    %81 = vector.broadcast %cst_27 : f32 to vector<32x8xf32>
    %82 = arith.addf %81, %80 : vector<32x8xf32>
    %83 = arith.divf %81, %82 : vector<32x8xf32>
    %84 = vector.extract_strided_slice %64 {offsets = [64, 0], sizes = [32, 8], strides = [1, 1]} : vector<96x8xf32> to vector<32x8xf32>
    %85 = arith.addf %84, %16 : vector<32x8xf32>
    %86 = vector.extract_strided_slice %65 {offsets = [64, 0], sizes = [32, 8], strides = [1, 1]} : vector<96x8xf32> to vector<32x8xf32>
    %87 = arith.addf %86, %20 : vector<32x8xf32>
    %88 = arith.mulf %74, %87 : vector<32x8xf32>
    %89 = arith.addf %85, %88 : vector<32x8xf32>
    %90 = math.tanh %89 : vector<32x8xf32>
    %cst_28 = arith.constant 1.000000e+00 : f32
    %91 = vector.broadcast %cst_28 : f32 to vector<32x8xf32>
    %92 = arith.subf %91, %83 : vector<32x8xf32>
    %93 = arith.mulf %92, %90 : vector<32x8xf32>
    %94 = arith.mulf %83, %60 : vector<32x8xf32>
    %95 = arith.addf %93, %94 : vector<32x8xf32>
    %c3_i32_29 = arith.constant 3 : i32
    %96 = arith.muli %arg1, %c3_i32_29 : i32
    %97 = arith.addi %96, %c1_i32 : i32
    %c8_i32_30 = arith.constant 8 : i32
    %98 = arith.cmpi slt, %97, %c8_i32_30 : i32
    %99 = arith.select %98, %95, %60 : vector<32x8xf32>
    %c2_i32 = arith.constant 2 : i32
    %100 = arith.index_cast %c2_i32 : i32 to index
    %c0_31 = arith.constant 0 : index
    %c0_32 = arith.constant 0 : index
    %101 = vector.load %arg2[%100, %c0_31, %c0_32] : memref<3x32x8xf32, #tpu.memory_space<vmem>>, vector<1x32x8xf32>
    %102 = vector.shape_cast %101 : vector<1x32x8xf32> to vector<32x8xf32>
    %cst_33 = arith.constant dense<0.000000e+00> : vector<96x8xf32>
    %103 = tpu.matmul %3, %102, %cst_33 {dimension_numbers = #tpu.dot_dimension_numbers<[1], [0], [0], [1], [0, 0, 1, 1], [], []>} : vector<96x32xf32>, vector<32x8xf32>, vector<96x8xf32> -> vector<96x8xf32>
    %cst_34 = arith.constant dense<0.000000e+00> : vector<96x8xf32>
    %104 = tpu.matmul %4, %99, %cst_34 {dimension_numbers = #tpu.dot_dimension_numbers<[1], [0], [0], [1], [0, 0, 1, 1], [], []>} : vector<96x32xf32>, vector<32x8xf32>, vector<96x8xf32> -> vector<96x8xf32>
    %105 = vector.extract_strided_slice %103 {offsets = [0, 0], sizes = [32, 8], strides = [1, 1]} : vector<96x8xf32> to vector<32x8xf32>
    %106 = vector.extract_strided_slice %104 {offsets = [0, 0], sizes = [32, 8], strides = [1, 1]} : vector<96x8xf32> to vector<32x8xf32>
    %107 = arith.addf %105, %106 : vector<32x8xf32>
    %108 = arith.addf %107, %8 : vector<32x8xf32>
    %109 = arith.negf %108 : vector<32x8xf32>
    %110 = math.exp %109 : vector<32x8xf32>
    %cst_35 = arith.constant 1.000000e+00 : f32
    %111 = vector.broadcast %cst_35 : f32 to vector<32x8xf32>
    %112 = arith.addf %111, %110 : vector<32x8xf32>
    %113 = arith.divf %111, %112 : vector<32x8xf32>
    %114 = vector.extract_strided_slice %103 {offsets = [32, 0], sizes = [32, 8], strides = [1, 1]} : vector<96x8xf32> to vector<32x8xf32>
    %115 = vector.extract_strided_slice %104 {offsets = [32, 0], sizes = [32, 8], strides = [1, 1]} : vector<96x8xf32> to vector<32x8xf32>
    %116 = arith.addf %114, %115 : vector<32x8xf32>
    %117 = arith.addf %116, %12 : vector<32x8xf32>
    %118 = arith.negf %117 : vector<32x8xf32>
    %119 = math.exp %118 : vector<32x8xf32>
    %cst_36 = arith.constant 1.000000e+00 : f32
    %120 = vector.broadcast %cst_36 : f32 to vector<32x8xf32>
    %121 = arith.addf %120, %119 : vector<32x8xf32>
    %122 = arith.divf %120, %121 : vector<32x8xf32>
    %123 = vector.extract_strided_slice %103 {offsets = [64, 0], sizes = [32, 8], strides = [1, 1]} : vector<96x8xf32> to vector<32x8xf32>
    %124 = arith.addf %123, %16 : vector<32x8xf32>
    %125 = vector.extract_strided_slice %104 {offsets = [64, 0], sizes = [32, 8], strides = [1, 1]} : vector<96x8xf32> to vector<32x8xf32>
    %126 = arith.addf %125, %20 : vector<32x8xf32>
    %127 = arith.mulf %113, %126 : vector<32x8xf32>
    %128 = arith.addf %124, %127 : vector<32x8xf32>
    %129 = math.tanh %128 : vector<32x8xf32>
    %cst_37 = arith.constant 1.000000e+00 : f32
    %130 = vector.broadcast %cst_37 : f32 to vector<32x8xf32>
    %131 = arith.subf %130, %122 : vector<32x8xf32>
    %132 = arith.mulf %131, %129 : vector<32x8xf32>
    %133 = arith.mulf %122, %99 : vector<32x8xf32>
    %134 = arith.addf %132, %133 : vector<32x8xf32>
    %c3_i32_38 = arith.constant 3 : i32
    %135 = arith.muli %arg1, %c3_i32_38 : i32
    %136 = arith.addi %135, %c2_i32 : i32
    %c8_i32_39 = arith.constant 8 : i32
    %137 = arith.cmpi slt, %136, %c8_i32_39 : i32
    %138 = arith.select %137, %134, %99 : vector<32x8xf32>
    %c3_i32_40 = arith.constant 3 : i32
    %c0_41 = arith.constant 0 : index
    %c0_42 = arith.constant 0 : index
    %139 = vector.load %arg7[%c0_41, %c0_42] : memref<32x8xf32, #tpu.memory_space<vmem>>, vector<32x8xf32>
    tpu.vector_store %arg7[%c0_41, %c0_42], %138 {strides = array<i32>} : memref<32x8xf32, #tpu.memory_space<vmem>>, vector<32x8xf32>,
    %c2_i32_43 = arith.constant 2 : i32
    %140 = arith.cmpi eq, %arg1, %c2_i32_43 : i32
    %141 = arith.extui %140 : i1 to i32
    %c0_i32_44 = arith.constant 0 : i32
    %142 = arith.cmpi ne, %141, %c0_i32_44 : i32
    scf.if %142 {
      %c0_45 = arith.constant 0 : index
      %c0_46 = arith.constant 0 : index
      %143 = vector.load %arg6[%c0_45, %c0_46] : memref<32x8xf32, #tpu.memory_space<vmem>>, vector<32x8xf32>
      tpu.vector_store %arg6[%c0_45, %c0_46], %138 {strides = array<i32>} : memref<32x8xf32, #tpu.memory_space<vmem>>, vector<32x8xf32>,
    } else {
    }
    return
  }
  func.func @transform_0(%arg0: i32, %arg1: i32) -> (i32, i32, i32) {
    %c0_i32 = arith.constant 0 : i32
    %c0_i32_0 = arith.constant 0 : i32
    return %arg1, %c0_i32, %arg0 : i32, i32, i32
  }
  func.func @transform_1(%arg0: i32, %arg1: i32) -> (i32, i32) {
    %c0_i32 = arith.constant 0 : i32
    %c0_i32_0 = arith.constant 0 : i32
    %c0_i32_1 = arith.constant 0 : i32
    return %c0_i32, %c0_i32_0 : i32, i32
  }
  func.func @transform_2(%arg0: i32, %arg1: i32) -> (i32, i32) {
    %c0_i32 = arith.constant 0 : i32
    %c0_i32_0 = arith.constant 0 : i32
    %c0_i32_1 = arith.constant 0 : i32
    return %c0_i32, %c0_i32_0 : i32, i32
  }
  func.func @transform_3(%arg0: i32, %arg1: i32) -> (i32, i32, i32) {
    %c0_i32 = arith.constant 0 : i32
    %c0_i32_0 = arith.constant 0 : i32
    %c0_i32_1 = arith.constant 0 : i32
    %c0_i32_2 = arith.constant 0 : i32
    return %c0_i32, %c0_i32_0, %c0_i32_1 : i32, i32, i32
  }
  func.func @transform_4(%arg0: i32, %arg1: i32) -> (i32, i32) {
    %c0_i32 = arith.constant 0 : i32
    %c0_i32_0 = arith.constant 0 : i32
    return %c0_i32, %arg0 : i32, i32
  }
}

</mosaic_0001>

<bundles_post_ra>
// kernel: tpu_custom_call.1
= control target key start
LH: loop header
LB: loop body
LE: loop exit
PB: predicated region body
PF: predicated region fallthrough
CT: control target
= control target key end

     0   :  { %s2253_s15 = smov 0   ;;  %s2255_s16 = smov 0   ;;  %s2803_s0 = inlined_call_operand.vmem [shape: f32[9,32,8], index: 0, kind: input, shape index: {}]   ;;  %s2804_s1 = inlined_call_operand.vmem [shape: f32[96,32], index: 1, kind: input, shape index: {}]   ;;  %s2805_s2 = inlined_call_operand.vmem [shape: f32[96,32], index: 2, kind: input, shape index: {}]   ;;  %s2806_s3 = inlined_call_operand.vmem [shape: f32[4,32,1], index: 3, kind: input, shape index: {}]   ;;  %s2807_s4 = inlined_call_operand.vmem [shape: f32[32,8], index: 4, kind: output, shape index: {}]  }
   0x1   :  { %s2257_s17 = smov 0  }
   0x2 LB: > { %s23_s18 = sadd.s32 1, %s2220_s16  ;;  %p1605_p0 = scmp.ge.s32.totalorder %s2224_s17, 1  ;;  %s2224_s17 = sphi %s2257_s17, %s14_s17   ;;  %s2220_s16 = sphi %s2255_s16, %s2811_s16   ;;  %s2216_s15 = sphi %s2253_s15, %s2810_s15  }
   0x3   : > { %p24_p1 = scmp.ge.s32.totalorder %s23_s18, 3  ;;  %p181_p2 = scmp.lt.s32.totalorder %s2224_s17, 4 }
   0x5   : > { %s2813_s18 = smov (%p24_p1, %s23_s18), 0  ;;  %p182_p3 = pnand %p1605_p0, %p181_p2 }
   0x6   : > { %s2274_s19 = smul.u32 (!%p182_p3), 3, %s2216_s15  ;;  %p1608_p5 = scmp.ne.s32.totalorder (!%p182_p3), %s2216_s15, 0 }
   0x7   : > { %185 = sbr.rel (%p182_p3) target bundleno = 846 (0x34e), region = 36 }
   0x8   : > { %p211_p4 = scmp.lt.s32.totalorder (!%p182_p3), %s2274_s19, 8 }
   0xe   : > { %s212_s20 = scalar_select %p211_p4, %s2274_s19, 8 }
   0xf   : > { %227 = sbr.rel (%p1608_p5) target bundleno = 22 (0x16), region = 40  ;;  %vm228_vm0 = vcmask (!%p1608_p5), 64512   ;;  %v2226_v0 = vmov (!%p1608_p5), 0.0  }
  0x10   : > { %s1729_s21 = sshll.u32 %s212_s20, 5  ;;  %229 = vst.msk [vmem:[#allocation2] sm:$0xff] (!%p1608_p5), %vm228_vm0, %v2226_v0  ;;  %230 = vst.msk [vmem:[#allocation2 + $0x8] sm:$0xff] (!%p1608_p5), %vm228_vm0, %v2226_v0 }
  0x11   : > { %s2283_s24 = scalar_lea.vmem %s2803_s0, %s1729_s21  ;;  %231 = vst.msk [vmem:[#allocation2 + $0x10] sm:$0xff] (!%p1608_p5), %vm228_vm0, %v2226_v0  ;;  %232 = vst.msk [vmem:[#allocation2 + $0x18] sm:$0xff] (!%p1608_p5), %vm228_vm0, %v2226_v0 }
  0x16 PF: > { %v360_v1 = vld [vmem:[%s2283_s24] sm:$0xff]  ;;  %v361_v2 = vld [vmem:[%s2283_s24 + $0x8] sm:$0xff]  ;;  %vm364_vm1 = vcmask 261120   ;;  %v362_v6 = vld [vmem:[%s2283_s24 + $0x10] sm:$0xff]  ;;  %v2227_v8 = vmov 0   ;;  %s1151_s22 = sadd.s32 1, %s2274_s19 }
  0x17   : > { %v2288_v3 = vld [vmem:[#allocation2] sm:$0xff]  ;;  %v1982_v4 = vpack.c.bf16 %v361_v2, %v360_v1  ;;  %v2290_v5 = vld [vmem:[#allocation2 + $0x8] sm:$0xff]  ;;  %v363_v7 = vld [vmem:[%s2283_s24 + $0x18] sm:$0xff]  ;;  %2080 = vset.pattern.permute.xlu0 %v2227_v8  ;;  %2081 = vset.pattern.permute.xlu1 %v2227_v8  ;;  %s789_s21 = scalar_select %p211_p4, 1, 0  ;;  %vm1524_vm5 = vcmask 64512  }
  0x18   : > { %v1990_v9 = vpack.c.bf16 %v2290_v5, %v2288_v3  ;;  %v1986_v10 = vpack.c.bf16 %v363_v7, %v362_v6  ;;  %v2296_v11 = vld [vmem:[#allocation2 + $0x10] sm:$0xff]  ;;  %v2298_v12 = vld [vmem:[#allocation2 + $0x18] sm:$0xff]  ;;  %v2303_v13 = vld [vmem:[%s2804_s1] sm:$0xff]  ;;  %p1152_p6 = scmp.lt.s32.totalorder %s1151_s22, 8  ;;  %s1515_s25 = sadd.s32 2, %s2274_s19 }
  0x19   : > { %1983 = vmatprep.subr.bf16.mxu1 %v1982_v4  ;;  %v1994_v14 = vpack.c.bf16 %v2298_v12, %v2296_v11  ;;  %1834 = vmatprep.mubr.msk.f32.mxu1 %vm364_vm1, %v2303_v13  ;;  %v2312_v15 = vld [vmem:[%s2805_s2] sm:$0xff]  ;;  %v2319_v16 = vld [vmem:[%s2804_s1 + $0x8] sm:$0xff]  ;;  %v2329_v18 = vld [vmem:[%s2804_s1 + $0x10] sm:$0xff]  ;;  %p1516_p7 = scmp.lt.s32.totalorder %s1515_s25, 8  ;;  %p1725_p8 = scmp.ne.s32.totalorder %s2216_s15, 2 }
  0x1a   : > { %1991 = vmatprep.subr.bf16.mxu0 %v1990_v9  ;;  %1985 = vmatpush3.bf16.msra.mxu1 %v1982_v4  ;;  %v2324_v17 = vld [vmem:[%s2805_s2 + $0x8] sm:$0xff]  ;;  %v1653_v19 = vld [vmem:[%s2283_s24 + $0x20] sm:$0xff]  ;;  %v2336_v21 = vld [vmem:[%s2805_s2 + $0x10] sm:$0xff]  ;;  %s1153_s23 = scalar_select %p1152_p6, 1, 0 }
  0x1b   : > { %1993 = vmatpush3.bf16.msra.mxu0 %v1990_v9  ;;  %1987 = vmatprep.subr.bf16.mxu1 %v1986_v10  ;;  %v1654_v20 = vld [vmem:[%s2283_s24 + $0x28] sm:$0xff]  ;;  %v1689_v23 = vld [vmem:[%s2283_s24 + $0x40] sm:$0xff]  ;;  %v2345_v25 = vld [vmem:[%s2804_s1 + $0x18] sm:$0xff] }
  0x1c   : > { %1995 = vmatprep.subr.bf16.mxu0 %v1994_v14  ;;  %1860 = vmatprep.mubr.msk.f32.mxu0 %vm364_vm1, %v2312_v15  ;;  %v1998_v22 = vpack.c.bf16 %v1654_v20, %v1653_v19  ;;  %v1690_v24 = vld [vmem:[%s2283_s24 + $0x48] sm:$0xff]  ;;  %v1655_v27 = vld [vmem:[%s2283_s24 + $0x30] sm:$0xff]  ;;  %v1656_v28 = vld [vmem:[%s2283_s24 + $0x38] sm:$0xff] }
  0x1d   : > { %v2014_v26 = vpack.c.bf16 %v1690_v24, %v1689_v23  ;;  %v1691_v29 = vld [vmem:[%s2283_s24 + $0x50] sm:$0xff]  ;;  %v2359_v30 = vld [vmem:[%s2805_s2 + $0x18] sm:$0xff]  ;;  %v2364_v31 = vld [vmem:[%s2804_s1 + $0x20] sm:$0xff]  ;;  %v2002_v32 = vpack.c.bf16 %v1656_v28, %v1655_v27 }
  0x1e   : > { %1989 = vmatpush3.bf16.msra.mxu1 %v1986_v10  ;;  %v1692_v33 = vld [vmem:[%s2283_s24 + $0x58] sm:$0xff]  ;;  %v2370_v34 = vld [vmem:[%s2805_s2 + $0x20] sm:$0xff]  ;;  %v2381_v36 = vld [vmem:[%s2804_s1 + $0x28] sm:$0xff]  ;;  %s1517_s24 = scalar_select %p1516_p7, 1, 0 }
  0x1f   : > { %1997 = vmatpush3.bf16.msra.mxu0 %v1994_v14  ;;  %1999 = vmatprep.subr.bf16.mxu1 %v1998_v22  ;;  %v2018_v35 = vpack.c.bf16 %v1692_v33, %v1691_v29  ;;  %v2388_v37 = vld [vmem:[%s2805_s2 + $0x28] sm:$0xff]  ;;  %v2393_v38 = vld [vmem:[%s2804_s1 + $0x30] sm:$0xff]  ;;  %v257_v40 = vld [vmem:[%s2806_s3] sm:$0xff] }
  0x20   : > { %2015 = vmatprep.subr.bf16.mxu0 %v2014_v26  ;;  %v2398_v39 = vld [vmem:[%s2805_s2 + $0x30] sm:$0xff]  ;;  %v2415_v42 = vld [vmem:[%s2804_s1 + $0x38] sm:$0xff]  ;;  %v2427_v44 = vld [vmem:[%s2804_s1 + $0x40] sm:$0xff]  ;;  %263 = vperm.xlu0 %2080, %v257_v40  }
  0x21   : > { %1835 = vmatmul.mubr.msk.f32.vlgmr.msra.gmra.mrb[0].mxu1 %vm364_vm1, %v2319_v16  ;;  %v259_v41 = vld [vmem:[%s2806_s3 + $0x10] sm:$0xff]  ;;  %v2422_v43 = vld [vmem:[%s2805_s2 + $0x38] sm:$0xff]  ;;  %v2432_v45 = vld [vmem:[%s2805_s2 + $0x40] sm:$0xff] }
  0x22   : > { %1861 = vmatmul.mubr.msk.f32.vlgmr.msra.gmra.mrb[0].mxu0 %vm364_vm1, %v2324_v17  ;;  %1837 = vmatprep.mubr.msk.f32.mxu1 %vm364_vm1, %v2329_v18  ;;  %v258_v46 = vld [vmem:[%s2806_s3 + $0x8] sm:$0xff]  ;;  %v260_v47 = vld [vmem:[%s2806_s3 + $0x18] sm:$0xff]  ;;  %v243_v50 = vld [vmem:[%s2804_s1 + $0x50] sm:$0xff] }
  0x23   : > { %1863 = vmatprep.mubr.msk.f32.mxu0 %vm364_vm1, %v2336_v21  ;;  %2001 = vmatpush3.bf16.msra.mxu1 %v1998_v22  ;;  %v242_v48 = vld [vmem:[%s2804_s1 + $0x48] sm:$0xff]  ;;  %v2462_v51 = vld [vmem:[%s2805_s2 + $0x50] sm:$0xff]  ;;  %v1609_v52 = vld [vmem:[%s2806_s3 + $0x20] sm:$0xff] }
  0x24   : > { %2017 = vmatpush3.bf16.msra.mxu0 %v2014_v26  ;;  %2003 = vmatprep.subr.bf16.mxu1 %v2002_v32  ;;  %v2454_v49 = vld [vmem:[%s2805_s2 + $0x48] sm:$0xff]  ;;  %v244_v54 = vld [vmem:[%s2804_s1 + $0x58] sm:$0xff]  ;;  %v1611_v56 = vld [vmem:[%s2806_s3 + $0x30] sm:$0xff] }
  0x25   : > { %1838 = vmatmul.mubr.msk.f32.gmra.mrb[2].mxu1 %vm364_vm1, %v2345_v25  ;;  %2019 = vmatprep.subr.bf16.mxu0 %v2018_v35  ;;  %v1610_v53 = vld [vmem:[%s2806_s3 + $0x28] sm:$0xff]  ;;  %v2482_v55 = vld [vmem:[%s2805_s2 + $0x58] sm:$0xff]  ;;  %v1617_v58 = vld [vmem:[%s2806_s3 + $0x60] sm:$0xff] }
  0x26   : > { %1864 = vmatmul.mubr.msk.f32.gmra.mrb[2].mxu0 %vm364_vm1, %v2359_v30  ;;  %1840 = vmatprep.mubr.msk.f32.mxu1 %vm364_vm1, %v2364_v31  ;;  %v1612_v57 = vld [vmem:[%s2806_s3 + $0x38] sm:$0xff]  ;;  %v1618_v59 = vld [vmem:[%s2806_s3 + $0x68] sm:$0xff]  ;;  %v1613_v60 = vld [vmem:[%s2806_s3 + $0x40] sm:$0xff] }
  0x27   : > { %1866 = vmatprep.mubr.msk.f32.mxu0 %vm364_vm1, %v2370_v34  ;;  %2005 = vmatpush3.bf16.msra.mxu1 %v2002_v32  ;;  %v1614_v61 = vld [vmem:[%s2806_s3 + $0x48] sm:$0xff]  ;;  %v1619_v62 = vld [vmem:[%s2806_s3 + $0x70] sm:$0xff]  ;;  %v1620_v63 = vld [vmem:[%s2806_s3 + $0x78] sm:$0xff] }
  0x28   : > { %2021 = vmatpush3.bf16.msra.mxu0 %v2018_v35  ;;  %273 = vperm.xlu1 %2081, %v259_v41   ;;  %v1615_v0 = vld [vmem:[%s2806_s3 + $0x50] sm:$0xff]  ;;  %v1616_v1 = vld [vmem:[%s2806_s3 + $0x58] sm:$0xff] }
  0x29   : > { %1841 = vmatmul.mubr.msk.f32.gmra.mrb[4].mxu1 %vm364_vm1, %v2381_v36  ;;  %268 = vperm.xlu0 %2080, %v258_v46  }
  0x2a   : > { %1867 = vmatmul.mubr.msk.f32.gmra.mrb[4].mxu0 %vm364_vm1, %v2388_v37  ;;  %1843 = vmatprep.mubr.msk.f32.mxu1 %vm364_vm1, %v2393_v38 }
  0x2b   : > { %1869 = vmatprep.mubr.msk.f32.mxu0 %vm364_vm1, %v2398_v39 }
  0x2c   : > { %278 = vperm.xlu1 %2081, %v260_v47  }
  0x2d   : > { %1844 = vmatmul.mubr.msk.f32.gmra.mrb[6].mxu1 %vm364_vm1, %v2415_v42  ;;  %288 = vperm.xlu0 %2080, %v1609_v52  }
  0x2e   : > { %1870 = vmatmul.mubr.msk.f32.gmra.mrb[6].mxu0 %vm364_vm1, %v2422_v43  ;;  %1846 = vmatprep.mubr.msk.f32.mxu1 %vm364_vm1, %v2427_v44 }
  0x2f   : > { %1872 = vmatprep.mubr.msk.f32.mxu0 %vm364_vm1, %v2432_v45 }
  0x30   : > { %293 = vperm.xlu1 %2081, %v1610_v53  }
  0x31   : > { %1847 = vmatmul.mubr.msk.f32.gmra.mrb[8].mxu1 %vm364_vm1, %v242_v48  ;;  %298 = vperm.xlu0 %2080, %v1611_v56  }
  0x32   : > { %1873 = vmatmul.mubr.msk.f32.gmra.mrb[8].mxu0 %vm364_vm1, %v2454_v49  ;;  %1849 = vmatprep.mubr.msk.f32.mxu1 %vm364_vm1, %v243_v50 }
  0x33   : > { %1875 = vmatprep.mubr.msk.f32.mxu0 %vm364_vm1, %v2462_v51 }
  0x34   : > { %303 = vperm.xlu1 %2081, %v1612_v57  }
  0x35   : > { %1850 = vmatmul.mubr.msk.f32.gmra.mrb[10].mxu1 %vm364_vm1, %v244_v54  ;;  %338 = vperm.xlu0 %2080, %v1617_v58  }
  0x36   : > { %1876 = vmatmul.mubr.msk.f32.gmra.mrb[10].mxu0 %vm364_vm1, %v2482_v55  ;;  %1886 = vmatprep.mubr.msk.f32.mxu1 %vm364_vm1, %v2303_v13 }
  0x37   : > { %1938 = vmatprep.mubr.msk.f32.mxu0 %vm364_vm1, %v2303_v13 }
  0x38   : > { %343 = vperm.xlu1 %2081, %v1618_v59  }
  0x39   : > { %1887 = vmatmul.mubr.msk.f32.vlgmr.msra.gmra.mrb[12].mxu1 %vm364_vm1, %v2319_v16  ;;  %313 = vperm.xlu0 %2080, %v1613_v60  }
  0x3a   : > { %1939 = vmatmul.mubr.msk.f32.vlgmr.msra.gmra.mrb[12].mxu0 %vm364_vm1, %v2319_v16  ;;  %1889 = vmatprep.mubr.msk.f32.mxu1 %vm364_vm1, %v2329_v18 }
  0x3b   : > { %1941 = vmatprep.mubr.msk.f32.mxu0 %vm364_vm1, %v2329_v18 }
  0x3c   : > { %318 = vperm.xlu1 %2081, %v1614_v61  }
  0x3d   : > { %1890 = vmatmul.mubr.msk.f32.gmra.mrb[14].mxu1 %vm364_vm1, %v2345_v25  ;;  %348 = vperm.xlu0 %2080, %v1619_v62  }
  0x3e   : > { %1942 = vmatmul.mubr.msk.f32.gmra.mrb[14].mxu0 %vm364_vm1, %v2345_v25  ;;  %1892 = vmatprep.mubr.msk.f32.mxu1 %vm364_vm1, %v2364_v31 }
  0x3f   : > { %1944 = vmatprep.mubr.msk.f32.mxu0 %vm364_vm1, %v2364_v31 }
  0x40   : > { %353 = vperm.xlu1 %2081, %v1620_v63  }
  0x41   : > { %1893 = vmatmul.mubr.msk.f32.gmra.mrb[16].mxu1 %vm364_vm1, %v2381_v36  ;;  %323 = vperm.xlu0 %2080, %v1615_v0  }
  0x42   : > { %1945 = vmatmul.mubr.msk.f32.gmra.mrb[16].mxu0 %vm364_vm1, %v2381_v36  ;;  %1895 = vmatprep.mubr.msk.f32.mxu1 %vm364_vm1, %v2393_v38 }
  0x43   : > { %1947 = vmatprep.mubr.msk.f32.mxu0 %vm364_vm1, %v2393_v38 }
  0x44   : > { %328 = vperm.xlu1 %2081, %v1616_v1  }
  0x45   : > { %1896 = vmatmul.mubr.msk.f32.gmra.mrb[18].mxu1 %vm364_vm1, %v2415_v42 }
  0x46   : > { %1948 = vmatmul.mubr.msk.f32.gmra.mrb[18].mxu0 %vm364_vm1, %v2415_v42  ;;  %1898 = vmatprep.mubr.msk.f32.mxu1 %vm364_vm1, %v2427_v44 }
  0x47   : > { %1950 = vmatprep.mubr.msk.f32.mxu0 %vm364_vm1, %v2427_v44 }
  0x49   : > { %1899 = vmatmul.mubr.msk.f32.gmra.mrb[20].mxu1 %vm364_vm1, %v242_v48 }
  0x4a   : > { %1951 = vmatmul.mubr.msk.f32.gmra.mrb[20].mxu0 %vm364_vm1, %v242_v48  ;;  %1901 = vmatprep.mubr.msk.f32.mxu1 %vm364_vm1, %v243_v50 }
  0x4b   : > { %1953 = vmatprep.mubr.msk.f32.mxu0 %vm364_vm1, %v243_v50 }
  0x4d   : > { %1902 = vmatmul.mubr.msk.f32.gmra.mrb[22].mxu1 %vm364_vm1, %v244_v54 }
  0x4e   : > { %1954 = vmatmul.mubr.msk.f32.gmra.mrb[22].mxu0 %vm364_vm1, %v244_v54  ;;  %1912 = vmatprep.mubr.msk.f32.mxu1 %vm364_vm1, %v2312_v15 }
  0x4f   : > { %1964 = vmatprep.mubr.msk.f32.mxu0 %vm364_vm1, %v2312_v15 }
  0x9f   : > { %v2565_v4 = vpop.permute.xlu0 %263 }
  0xa7   : > { %v2563_v2 = vpop.permute.xlu1 %273 }
  0xa8   : > { %v2569_v7 = vpop.permute.xlu0 %268 }
  0xab   : > { %v2567_v6 = vpop.permute.xlu1 %278 }
  0xac   : > { %v2575_v24 = vpop.permute.xlu0 %288 }
  0xaf   : > { %v2571_v18 = vpop.permute.xlu1 %293 }
  0xb0   : > { %v2581_v47 = vpop.permute.xlu0 %298 }
  0xb3   : > { %v2579_v38 = vpop.permute.xlu1 %303 }
  0xb7   : > { %v2585_v61 = vpop.permute.xlu1 %343 }
  0xf4   : > { %v1836_v8 = vpop.f32.mrb[0].mxu1 }
  0xf5   : > { %v1862_v9 = vpop.f32.mrb[0].mxu0  ;;  %v467_v10 = vpop.f32.mrb[1].mxu1 }
  0xf6   : > { %v688_v13 = vadd.f32 %v1862_v9, %v1836_v8  ;;  %v628_v14 = vpop.f32.mrb[1].mxu0 }
  0xf7   : > { %v687_v16 = vadd.f32 %v628_v14, %v467_v10  ;;  %v2589_v10 = vpop.permute.xlu0 %338 }
  0xf8   : > { %v692_v19 = vadd.f32 %v688_v13, %v2569_v7  ;;  %v1839_v20 = vpop.f32.mrb[2].mxu1 }
  0xf9   : > { %v691_v15 = vadd.f32 %v687_v16, %v2565_v4  ;;  %v1865_v22 = vpop.f32.mrb[2].mxu0  ;;  %v477_v23 = vpop.f32.mrb[3].mxu1 }
  0xfa   : > { %v1646_v25 = vmul.f32 -1.442695, %v692_v19  ;;  %v690_v26 = vadd.f32 %v1865_v22, %v1839_v20  ;;  %v638_v27 = vpop.f32.mrb[3].mxu0 }
  0xfb   : > { %v1645_v28 = vmul.f32 -1.442695, %v691_v15  ;;  %v689_v29 = vadd.f32 %v638_v27, %v477_v23 }
  0xfc   : > { %2082 = vpow2.f32 %v1646_v25  ;;  %v694_v31 = vadd.f32 %v690_v26, %v2567_v6  ;;  %v1842_v32 = vpop.f32.mrb[4].mxu1 }
  0xfd   : > { %2084 = vpow2.f32 %v1645_v28  ;;  %v693_v33 = vadd.f32 %v689_v29, %v2563_v2  ;;  %v1868_v35 = vpop.f32.mrb[4].mxu0  ;;  %v487_v36 = vpop.f32.mrb[5].mxu1 }
  0xfe   : > { %v1648_v40 = vmul.f32 -1.442695, %v694_v31  ;;  %v720_v41 = vadd.f32 %v1868_v35, %v1842_v32  ;;  %v648_v42 = vpop.f32.mrb[5].mxu0  ;;  %v2591_v29 = vpop.permute.xlu1 %318 }
  0xff   : > { %v1647_v44 = vmul.f32 -1.442695, %v693_v33  ;;  %v719_v46 = vadd.f32 %v648_v42, %v487_v36  ;;  %v2593_v32 = vpop.permute.xlu0 %313 }
 0x100   : > { %2086 = vpow2.f32 %v1648_v40  ;;  %v724_v48 = vadd.f32 %v720_v41, %v2571_v18  ;;  %v1845_v50 = vpop.f32.mrb[6].mxu1 }
 0x101   : > { %2088 = vpow2.f32 %v1647_v44  ;;  %v723_v52 = vadd.f32 %v719_v46, %v2575_v24  ;;  %v1871_v53 = vpop.f32.mrb[6].mxu0  ;;  %v497_v54 = vpop.f32.mrb[7].mxu1 }
 0x102   : > { %v1650_v56 = vmul.f32 -1.442695, %v724_v48  ;;  %v722_v57 = vadd.f32 %v1871_v53, %v1845_v50  ;;  %v658_v58 = vpop.f32.mrb[7].mxu0  ;;  %v2595_v40 = vpop.permute.xlu1 %353 }
 0x103   : > { %v1649_v59 = vmul.f32 -1.442695, %v723_v52  ;;  %v721_v60 = vadd.f32 %v658_v58, %v497_v54  ;;  %v2597_v44 = vpop.permute.xlu0 %348 }
 0x104   : > { %2090 = vpow2.f32 %v1650_v56  ;;  %v726_v62 = vadd.f32 %v722_v57, %v2579_v38  ;;  %v1848_v63 = vpop.f32.mrb[8].mxu1 }
 0x105   : > { %2092 = vpow2.f32 %v1649_v59  ;;  %v725_v0 = vadd.f32 %v721_v60, %v2581_v47  ;;  %v1874_v1 = vpop.f32.mrb[8].mxu0  ;;  %v507_v8 = vpop.f32.mrb[9].mxu1  ;;  %v752_v56 = vadd.f32 %v1848_v63, %v2591_v29 }
 0x106   : > { %v2083_v9 = vpop.eup %2082  ;;  %v1652_v13 = vmul.f32 -1.442695, %v726_v62  ;;  %v668_v14 = vpop.f32.mrb[9].mxu0  ;;  %v756_v48 = vadd.f32 %v1874_v1, %v2585_v61  ;;  %v751_v59 = vadd.f32 %v507_v8, %v2593_v32 }
 0x107   : > { %v2085_v16 = vpop.eup %2084  ;;  %v708_v19 = vadd.f32 1.0, %v2083_v9  ;;  %v1651_v20 = vmul.f32 -1.442695, %v725_v0  ;;  %v755_v53 = vadd.f32 %v668_v14, %v2589_v10  ;;  %v329_v1 = vpop.permute.xlu1 %328 }
 0x108   : > { %v707_v15 = vadd.f32 1.0, %v2085_v16  ;;  %2094 = vpow2.f32 %v1652_v13  ;;  %v1851_v22 = vpop.f32.mrb[10].mxu1 }
 0x109   : > { %2096 = vrcp.f32 %v708_v19  ;;  %v1877_v23 = vpop.f32.mrb[10].mxu0  ;;  %v517_v25 = vpop.f32.mrb[11].mxu1  ;;  %v754_v63 = vadd.f32 %v1851_v22, %v329_v1 }
 0x10a   : > { %v2087_v26 = vpop.eup %2086  ;;  %2098 = vrcp.f32 %v707_v15  ;;  %v678_v27 = vpop.f32.mrb[11].mxu0  ;;  %v758_v9 = vadd.f32 %v1877_v23, %v2595_v40 }
 0x10b   : > { %v2089_v28 = vpop.eup %2088  ;;  %v710_v31 = vadd.f32 1.0, %v2087_v26  ;;  %2100 = vpow2.f32 %v1651_v20  ;;  %v757_v14 = vadd.f32 %v678_v27, %v2597_v44  ;;  %v324_v20 = vpop.permute.xlu0 %323 }
 0x10c   : > { %v709_v33 = vadd.f32 1.0, %v2089_v28  ;;  %v753_v8 = vadd.f32 %v517_v25, %v324_v20 }
 0x10d   : > { %2102 = vrcp.f32 %v710_v31 }
 0x10e   : > { %v2091_v35 = vpop.eup %2090  ;;  %2104 = vrcp.f32 %v709_v33 }
 0x10f   : > { %v2093_v36 = vpop.eup %2092  ;;  %v740_v41 = vadd.f32 1.0, %v2091_v35 }
 0x110   : > { %v739_v46 = vadd.f32 1.0, %v2093_v36 }
 0x111   : > { %2106 = vrcp.f32 %v740_v41 }
 0x112   : > { %v2095_v42 = vpop.eup %2094  ;;  %2108 = vrcp.f32 %v739_v46 }
 0x113   : > { %v2097_v50 = vpop.eup %2096  ;;  %v742_v52 = vadd.f32 1.0, %v2095_v42 }
 0x114   : > { %v2099_v54 = vpop.eup %2098  ;;  %v760_v57 = vmul.f32 %v2097_v50, %v756_v48 }
 0x115   : > { %v2101_v58 = vpop.eup %2100  ;;  %v759_v60 = vmul.f32 %v2099_v54, %v755_v53  ;;  %2110 = vrcp.f32 %v742_v52 }
 0x116   : > { %v741_v62 = vadd.f32 1.0, %v2101_v58  ;;  %v764_v0 = vadd.f32 %v760_v57, %v752_v56  ;;  %v790_v57 = vstv %s789_s21 }
 0x117   : > { %v2103_v13 = vpop.eup %2102  ;;  %v763_v16 = vadd.f32 %v759_v60, %v751_v59  ;;  %vm2625_vm2 = vcmp.eq.s32.totalorder %v790_v57, 1 }
 0x118   : > { %v2105_v19 = vpop.eup %2104  ;;  %2112 = vrcp.f32 %v741_v62  ;;  %v762_v15 = vmul.f32 %v2103_v13, %v758_v9 }
 0x119   : > { %2114 = vtanh.f32 %v764_v0  ;;  %v761_v26 = vmul.f32 %v2105_v19, %v757_v14 }
 0x11a   : > { %2116 = vtanh.f32 %v763_v16  ;;  %v766_v28 = vadd.f32 %v762_v15, %v754_v63 }
 0x11b   : > { %v765_v31 = vadd.f32 %v761_v26, %v753_v8  ;;  %v2107_v22 = vpop.eup %2106 }
 0x11c   : > { %2118 = vtanh.f32 %v766_v28  ;;  %v2605_v23 = vpop.f32.mrb[20].mxu1  ;;  %v2109_v36 = vpop.eup %2108  ;;  %v772_v56 = vsub.f32 1.0, %v2107_v22  ;;  %v780_v9 = vmul.f32 %v2107_v22, %v2290_v5 }
 0x11d   : > { %2120 = vtanh.f32 %v765_v31  ;;  %v2607_v33 = vpop.f32.mrb[20].mxu0  ;;  %v2609_v35 = vpop.f32.mrb[21].mxu1  ;;  %v771_v60 = vsub.f32 1.0, %v2109_v36  ;;  %v779_v16 = vmul.f32 %v2109_v36, %v2288_v3 }
 0x11e   : > { %v2611_v27 = vpop.f32.mrb[21].mxu0 }
 0x11f   : > { %v2111_v25 = vpop.eup %2110 }
 0x120   : > { %v1903_v41 = vpop.f32.mrb[22].mxu1  ;;  %v782_v28 = vmul.f32 %v2111_v25, %v2298_v12 }
 0x121   : > { %v2615_v42 = vadd.f32 %v1903_v41, %v329_v1  ;;  %v1955_v46 = vpop.f32.mrb[22].mxu0  ;;  %v917_v48 = vpop.f32.mrb[23].mxu1 }
 0x122   : > { %v2113_v50 = vpop.eup %2112  ;;  %v2617_v52 = vadd.f32 %v1955_v46, %v329_v1  ;;  %v2619_v53 = vadd.f32 %v917_v48, %v324_v20  ;;  %v1281_v54 = vpop.f32.mrb[23].mxu0  ;;  %v774_v1 = vsub.f32 1.0, %v2111_v25 }
 0x123   : > { %v2115_v58 = vpop.eup %2114  ;;  %v2621_v59 = vadd.f32 %v1281_v54, %v324_v20  ;;  %v773_v15 = vsub.f32 1.0, %v2113_v50  ;;  %v781_v36 = vmul.f32 %v2113_v50, %v2296_v11 }
 0x124   : > { %v2117_v62 = vpop.eup %2116  ;;  %v776_v0 = vmul.f32 %v2115_v58, %v772_v56 }
 0x125   : > { %v775_v13 = vmul.f32 %v2117_v62, %v771_v60 }
 0x126   : > { %v2119_v19 = vpop.eup %2118  ;;  %v784_v63 = vadd.f32 %v780_v9, %v776_v0 }
 0x127   : > { %v2121_v8 = vpop.eup %2120  ;;  %v783_v26 = vadd.f32 %v779_v16, %v775_v13  ;;  %v778_v20 = vmul.f32 %v2119_v19, %v774_v1 }
 0x128   : > { %v2633_v31 = vsel %vm2625_vm2, %v784_v63, %v2290_v5  ;;  %v777_v22 = vmul.f32 %v2121_v8, %v773_v15 }
 0x129   : > { %v2639_v41 = vsel %vm2625_vm2, %v783_v26, %v2288_v3  ;;  %v786_v46 = vadd.f32 %v782_v28, %v778_v20 }
 0x12a   : > { %v2006_v48 = vpack.c.bf16 %v2633_v31, %v2639_v41  ;;  %v785_v54 = vadd.f32 %v781_v36, %v777_v22 }
 0x12b   : > { %v2646_v25 = vsel %vm2625_vm2, %v786_v46, %v2298_v12 }
 0x12c   : > { %2007 = vmatprep.subr.bf16.mxu1 %v2006_v48  ;;  %v2651_v5 = vsel %vm2625_vm2, %v785_v54, %v2296_v11 }
 0x12d   : > { %2009 = vmatpush3.bf16.msra.mxu1 %v2006_v48  ;;  %v2010_v3 = vpack.c.bf16 %v2646_v25, %v2651_v5 }
 0x12f   : > { %2011 = vmatprep.subr.bf16.mxu1 %v2010_v3 }
 0x131   : > { %2013 = vmatpush3.bf16.msra.mxu1 %v2010_v3 }
 0x134   : > { %1913 = vmatmul.mubr.msk.f32.vlgmr.msra.gmra.mrb[12].mxu1 %vm364_vm1, %v2324_v17 }
 0x135   : > { %1915 = vmatprep.mubr.msk.f32.mxu1 %vm364_vm1, %v2336_v21 }
 0x138   : > { %1916 = vmatmul.mubr.msk.f32.gmra.mrb[14].mxu1 %vm364_vm1, %v2359_v30 }
 0x139   : > { %1918 = vmatprep.mubr.msk.f32.mxu1 %vm364_vm1, %v2370_v34 }
 0x13c   : > { %1919 = vmatmul.mubr.msk.f32.gmra.mrb[16].mxu1 %vm364_vm1, %v2388_v37 }
 0x13d   : > { %1921 = vmatprep.mubr.msk.f32.mxu1 %vm364_vm1, %v2398_v39 }
 0x140   : > { %1922 = vmatmul.mubr.msk.f32.gmra.mrb[18].mxu1 %vm364_vm1, %v2422_v43 }
 0x141   : > { %1924 = vmatprep.mubr.msk.f32.mxu1 %vm364_vm1, %v2432_v45 }
 0x144   : > { %1925 = vmatmul.mubr.msk.f32.gmra.mrb[24].mxu1 %vm364_vm1, %v2454_v49 }
 0x145   : > { %1927 = vmatprep.mubr.msk.f32.mxu1 %vm364_vm1, %v2462_v51 }
 0x148   : > { %1928 = vmatmul.mubr.msk.f32.gmra.mrb[26].mxu1 %vm364_vm1, %v2482_v55 }
 0x207   : > { %v1914_v11 = vpop.f32.mrb[12].mxu1 }
 0x208   : > { %v1056_v12 = vadd.f32 %v1914_v11, %v2569_v7  ;;  %v992_v50 = vpop.f32.mrb[13].mxu1 }
 0x209   : > { %v1055_v56 = vadd.f32 %v992_v50, %v2565_v4 }
 0x20a   : > { %v1682_v57 = vmul.f32 -1.442695, %v1056_v12 }
 0x20b   : > { %v1681_v58 = vmul.f32 -1.442695, %v1055_v56  ;;  %v1917_v60 = vpop.f32.mrb[14].mxu1 }
 0x20c   : > { %2122 = vpow2.f32 %v1682_v57  ;;  %v1058_v62 = vadd.f32 %v1917_v60, %v2567_v6  ;;  %v1002_v0 = vpop.f32.mrb[15].mxu1 }
 0x20d   : > { %2124 = vpow2.f32 %v1681_v58  ;;  %v1057_v9 = vadd.f32 %v1002_v0, %v2563_v2 }
 0x20e   : > { %v1684_v13 = vmul.f32 -1.442695, %v1058_v62 }
 0x20f   : > { %v1683_v16 = vmul.f32 -1.442695, %v1057_v9  ;;  %v1920_v14 = vpop.f32.mrb[16].mxu1 }
 0x210   : > { %2126 = vpow2.f32 %v1684_v13  ;;  %v1088_v1 = vadd.f32 %v1920_v14, %v2571_v18  ;;  %v1012_v19 = vpop.f32.mrb[17].mxu1 }
 0x211   : > { %2128 = vpow2.f32 %v1683_v16  ;;  %v1087_v63 = vadd.f32 %v1012_v19, %v2575_v24 }
 0x212   : > { %v1686_v15 = vmul.f32 -1.442695, %v1088_v1 }
 0x213   : > { %v1685_v8 = vmul.f32 -1.442695, %v1087_v63  ;;  %v1923_v26 = vpop.f32.mrb[18].mxu1 }
 0x214   : > { %2130 = vpow2.f32 %v1686_v15  ;;  %v1090_v20 = vadd.f32 %v1923_v26, %v2579_v38  ;;  %v1022_v28 = vpop.f32.mrb[19].mxu1 }
 0x215   : > { %2132 = vpow2.f32 %v1685_v8  ;;  %v1089_v22 = vadd.f32 %v1022_v28, %v2581_v47 }
 0x216   : > { %v2123_v36 = vpop.eup %2122  ;;  %v1688_v46 = vmul.f32 -1.442695, %v1090_v20  ;;  %v1116_v20 = vadd.f32 %v2605_v23, %v2591_v29 }
 0x217   : > { %v2125_v48 = vpop.eup %2124  ;;  %v1072_v54 = vadd.f32 1.0, %v2123_v36  ;;  %v1687_v3 = vmul.f32 -1.442695, %v1089_v22  ;;  %v1926_v11 = vpop.f32.mrb[24].mxu1  ;;  %v1115_v36 = vadd.f32 %v2609_v35, %v2593_v32 }
 0x218   : > { %v1071_v12 = vadd.f32 1.0, %v2125_v48  ;;  %2134 = vpow2.f32 %v1688_v46  ;;  %v1032_v50 = vpop.f32.mrb[25].mxu1  ;;  %v1120_v19 = vadd.f32 %v1926_v11, %v2585_v61 }
 0x219   : > { %2136 = vrcp.f32 %v1072_v54  ;;  %v1119_v8 = vadd.f32 %v1032_v50, %v2589_v10 }
 0x21a   : > { %v2127_v56 = vpop.eup %2126  ;;  %2138 = vrcp.f32 %v1071_v12 }
 0x21b   : > { %v2129_v57 = vpop.eup %2128  ;;  %v1074_v58 = vadd.f32 1.0, %v2127_v56  ;;  %2140 = vpow2.f32 %v1687_v3  ;;  %v1929_v60 = vpop.f32.mrb[26].mxu1 }
 0x21c   : > { %v1073_v62 = vadd.f32 1.0, %v2129_v57  ;;  %v1042_v0 = vpop.f32.mrb[27].mxu1  ;;  %v1122_v3 = vadd.f32 %v1929_v60, %v2595_v40 }
 0x21d   : > { %2142 = vrcp.f32 %v1074_v58  ;;  %v1121_v50 = vadd.f32 %v1042_v0, %v2597_v44 }
 0x21e   : > { %v2131_v9 = vpop.eup %2130  ;;  %2144 = vrcp.f32 %v1073_v62 }
 0x21f   : > { %v2133_v13 = vpop.eup %2132  ;;  %v1104_v16 = vadd.f32 1.0, %v2131_v9 }
 0x220   : > { %v1103_v1 = vadd.f32 1.0, %v2133_v13 }
 0x221   : > { %2146 = vrcp.f32 %v1104_v16  ;;  %v1154_v16 = vstv %s1153_s23 }
 0x222   : > { %v2135_v14 = vpop.eup %2134  ;;  %2148 = vrcp.f32 %v1103_v1  ;;  %vm1155_vm3 = vcmp.eq.s32.totalorder %v1154_v16, 1 }
 0x223   : > { %v2137_v63 = vpop.eup %2136  ;;  %v1106_v15 = vadd.f32 1.0, %v2135_v14 }
 0x224   : > { %v2139_v26 = vpop.eup %2138  ;;  %v1124_v28 = vmul.f32 %v2137_v63, %v1120_v19 }
 0x225   : > { %v2141_v22 = vpop.eup %2140  ;;  %v1123_v46 = vmul.f32 %v2139_v26, %v1119_v8  ;;  %2150 = vrcp.f32 %v1106_v15 }
 0x226   : > { %v1105_v48 = vadd.f32 1.0, %v2141_v22  ;;  %v1128_v54 = vadd.f32 %v1124_v28, %v1116_v20 }
 0x227   : > { %v2143_v11 = vpop.eup %2142  ;;  %v1127_v12 = vadd.f32 %v1123_v46, %v1115_v36 }
 0x228   : > { %v2145_v56 = vpop.eup %2144  ;;  %2152 = vrcp.f32 %v1105_v48  ;;  %v1126_v23 = vmul.f32 %v2143_v11, %v1122_v3 }
 0x229   : > { %2154 = vtanh.f32 %v1128_v54  ;;  %v1125_v57 = vmul.f32 %v2145_v56, %v1121_v50 }
 0x22a   : > { %2156 = vtanh.f32 %v1127_v12  ;;  %v1130_v35 = vadd.f32 %v1126_v23, %v2615_v42 }
 0x22b   : > { %v1129_v58 = vadd.f32 %v1125_v57, %v2619_v53  ;;  %v2147_v60 = vpop.eup %2146 }
 0x22c   : > { %2158 = vtanh.f32 %v1130_v35  ;;  %v2149_v62 = vpop.eup %2148  ;;  %v1136_v0 = vsub.f32 1.0, %v2147_v60  ;;  %v1144_v15 = vmul.f32 %v2147_v60, %v2633_v31 }
 0x22d   : > { %2160 = vtanh.f32 %v1129_v58  ;;  %v1135_v1 = vsub.f32 1.0, %v2149_v62  ;;  %v1143_v42 = vmul.f32 %v2149_v62, %v2639_v41 }
 0x22f   : > { %v2151_v9 = vpop.eup %2150 }
 0x230   : > { %v1138_v53 = vsub.f32 1.0, %v2151_v9  ;;  %v1146_v48 = vmul.f32 %v2151_v9, %v2646_v25 }
 0x232   : > { %v2153_v13 = vpop.eup %2152 }
 0x233   : > { %v2155_v14 = vpop.eup %2154  ;;  %v1137_v28 = vsub.f32 1.0, %v2153_v13  ;;  %v1145_v11 = vmul.f32 %v2153_v13, %v2651_v5 }
 0x234   : > { %v2157_v19 = vpop.eup %2156  ;;  %v1140_v63 = vmul.f32 %v2155_v14, %v1136_v0 }
 0x235   : > { %v1139_v8 = vmul.f32 %v2157_v19, %v1135_v1 }
 0x236   : > { %v2159_v26 = vpop.eup %2158  ;;  %v1148_v20 = vadd.f32 %v1144_v15, %v1140_v63 }
 0x237   : > { %v2161_v22 = vpop.eup %2160  ;;  %v1147_v36 = vadd.f32 %v1143_v42, %v1139_v8  ;;  %v1142_v46 = vmul.f32 %v2159_v26, %v1138_v53 }
 0x238   : > { %v2701_v54 = vsel %vm1155_vm3, %v1148_v20, %v2633_v31  ;;  %v1141_v3 = vmul.f32 %v2161_v22, %v1137_v28 }
 0x239   : > { %v2706_v12 = vsel %vm1155_vm3, %v1147_v36, %v2639_v41  ;;  %v1150_v50 = vadd.f32 %v1146_v48, %v1142_v46 }
 0x23a   : > { %v2022_v56 = vpack.c.bf16 %v2701_v54, %v2706_v12  ;;  %v1149_v23 = vadd.f32 %v1145_v11, %v1141_v3 }
 0x23b   : > { %v2712_v57 = vsel %vm1155_vm3, %v1150_v50, %v2646_v25  ;;  %v1480_v50 = vadd.f32 %v2607_v33, %v2591_v29 }
 0x23c   : > { %2023 = vmatprep.subr.bf16.mxu0 %v2022_v56  ;;  %v2716_v31 = vsel %vm1155_vm3, %v1149_v23, %v2651_v5 }
 0x23d   : > { %2025 = vmatpush3.bf16.msra.mxu0 %v2022_v56  ;;  %v2026_v35 = vpack.c.bf16 %v2712_v57, %v2716_v31 }
 0x23f   : > { %2027 = vmatprep.subr.bf16.mxu0 %v2026_v35 }
 0x241   : > { %2029 = vmatpush3.bf16.msra.mxu0 %v2026_v35  ;;  %v1479_v35 = vadd.f32 %v2611_v27, %v2593_v32 }
 0x244   : > { %1965 = vmatmul.mubr.msk.f32.vlgmr.msra.gmra.mrb[12].mxu0 %vm364_vm1, %v2324_v17 }
 0x245   : > { %1967 = vmatprep.mubr.msk.f32.mxu0 %vm364_vm1, %v2336_v21 }
 0x248   : > { %1968 = vmatmul.mubr.msk.f32.gmra.mrb[14].mxu0 %vm364_vm1, %v2359_v30 }
 0x249   : > { %1970 = vmatprep.mubr.msk.f32.mxu0 %vm364_vm1, %v2370_v34 }
 0x24c   : > { %1971 = vmatmul.mubr.msk.f32.gmra.mrb[16].mxu0 %vm364_vm1, %v2388_v37 }
 0x24d   : > { %1973 = vmatprep.mubr.msk.f32.mxu0 %vm364_vm1, %v2398_v39 }
 0x250   : > { %1974 = vmatmul.mubr.msk.f32.gmra.mrb[18].mxu0 %vm364_vm1, %v2422_v43 }
 0x251   : > { %1976 = vmatprep.mubr.msk.f32.mxu0 %vm364_vm1, %v2432_v45 }
 0x254   : > { %1977 = vmatmul.mubr.msk.f32.gmra.mrb[24].mxu0 %vm364_vm1, %v2454_v49 }
 0x255   : > { %1979 = vmatprep.mubr.msk.f32.mxu0 %vm364_vm1, %v2462_v51 }
 0x258   : > { %1980 = vmatmul.mubr.msk.f32.gmra.mrb[26].mxu0 %vm364_vm1, %v2482_v55 }
 0x317   : > { %v1966_v17 = vpop.f32.mrb[12].mxu0 }
 0x318   : > { %v1420_v21 = vadd.f32 %v1966_v17, %v2569_v7  ;;  %v1356_v30 = vpop.f32.mrb[13].mxu0 }
 0x319   : > { %v1419_v34 = vadd.f32 %v1356_v30, %v2565_v4 }
 0x31a   : > { %v1718_v37 = vmul.f32 -1.442695, %v1420_v21 }
 0x31b   : > { %v1717_v39 = vmul.f32 -1.442695, %v1419_v34  ;;  %v1969_v43 = vpop.f32.mrb[14].mxu0 }
 0x31c   : > { %2162 = vpow2.f32 %v1718_v37  ;;  %v1422_v45 = vadd.f32 %v1969_v43, %v2567_v6  ;;  %v1366_v41 = vpop.f32.mrb[15].mxu0 }
 0x31d   : > { %2164 = vpow2.f32 %v1717_v39  ;;  %v1421_v49 = vadd.f32 %v1366_v41, %v2563_v2 }
 0x31e   : > { %v1720_v51 = vmul.f32 -1.442695, %v1422_v45 }
 0x31f   : > { %v1719_v25 = vmul.f32 -1.442695, %v1421_v49  ;;  %v1972_v5 = vpop.f32.mrb[16].mxu0 }
 0x320   : > { %2166 = vpow2.f32 %v1720_v51  ;;  %v1452_v55 = vadd.f32 %v1972_v5, %v2571_v18  ;;  %v1376_v7 = vpop.f32.mrb[17].mxu0 }
 0x321   : > { %2168 = vpow2.f32 %v1719_v25  ;;  %v1451_v4 = vadd.f32 %v1376_v7, %v2575_v24 }
 0x322   : > { %v1722_v58 = vmul.f32 -1.442695, %v1452_v55 }
 0x323   : > { %v1721_v60 = vmul.f32 -1.442695, %v1451_v4  ;;  %v1975_v62 = vpop.f32.mrb[18].mxu0 }
 0x324   : > { %2170 = vpow2.f32 %v1722_v58  ;;  %v1454_v6 = vadd.f32 %v1975_v62, %v2579_v38  ;;  %v1386_v9 = vpop.f32.mrb[19].mxu0 }
 0x325   : > { %2172 = vpow2.f32 %v1721_v60  ;;  %v1453_v2 = vadd.f32 %v1386_v9, %v2581_v47 }
 0x326   : > { %v2163_v13 = vpop.eup %2162  ;;  %v1724_v0 = vmul.f32 -1.442695, %v1454_v6 }
 0x327   : > { %v2165_v16 = vpop.eup %2164  ;;  %v1436_v14 = vadd.f32 1.0, %v2163_v13  ;;  %v1723_v1 = vmul.f32 -1.442695, %v1453_v2  ;;  %v1978_v18 = vpop.f32.mrb[24].mxu0 }
 0x328   : > { %v1435_v19 = vadd.f32 1.0, %v2165_v16  ;;  %2174 = vpow2.f32 %v1724_v0  ;;  %v1396_v63 = vpop.f32.mrb[25].mxu0  ;;  %v1484_v36 = vadd.f32 %v1978_v18, %v2585_v61 }
 0x329   : > { %2176 = vrcp.f32 %v1436_v14  ;;  %v1483_v3 = vadd.f32 %v1396_v63, %v2589_v10 }
 0x32a   : > { %v2167_v24 = vpop.eup %2166  ;;  %2178 = vrcp.f32 %v1435_v19 }
 0x32b   : > { %v2169_v15 = vpop.eup %2168  ;;  %v1438_v8 = vadd.f32 1.0, %v2167_v24  ;;  %2180 = vpow2.f32 %v1723_v1  ;;  %v1981_v38 = vpop.f32.mrb[26].mxu0 }
 0x32c   : > { %v1437_v42 = vadd.f32 1.0, %v2169_v15  ;;  %v1406_v53 = vpop.f32.mrb[27].mxu0  ;;  %v1486_v61 = vadd.f32 %v1981_v38, %v2595_v40 }
 0x32d   : > { %2182 = vrcp.f32 %v1438_v8  ;;  %v1485_v37 = vadd.f32 %v1406_v53, %v2597_v44  ;;  %v1518_v44 = vstv %s1517_s24 }
 0x32e   : > { %v2171_v47 = vpop.eup %2170  ;;  %2184 = vrcp.f32 %v1437_v42  ;;  %vm1519_vm4 = vcmp.eq.s32.totalorder %v1518_v44, 1 }
 0x32f   : > { %v2173_v26 = vpop.eup %2172  ;;  %v1468_v20 = vadd.f32 1.0, %v2171_v47 }
 0x330   : > { %v1467_v22 = vadd.f32 1.0, %v2173_v26 }
 0x331   : > { %2186 = vrcp.f32 %v1468_v20 }
 0x332   : > { %v2175_v28 = vpop.eup %2174  ;;  %2188 = vrcp.f32 %v1467_v22 }
 0x333   : > { %v2177_v46 = vpop.eup %2176  ;;  %v1470_v48 = vadd.f32 1.0, %v2175_v28 }
 0x334   : > { %v2179_v11 = vpop.eup %2178  ;;  %v1488_v56 = vmul.f32 %v2177_v46, %v1484_v36 }
 0x335   : > { %v2181_v23 = vpop.eup %2180  ;;  %v1487_v17 = vmul.f32 %v2179_v11, %v1483_v3  ;;  %2190 = vrcp.f32 %v1470_v48 }
 0x336   : > { %v1469_v21 = vadd.f32 1.0, %v2181_v23  ;;  %v1492_v30 = vadd.f32 %v1488_v56, %v1480_v50 }
 0x337   : > { %v2183_v34 = vpop.eup %2182  ;;  %v1491_v10 = vadd.f32 %v1487_v17, %v1479_v35 }
 0x338   : > { %v2185_v39 = vpop.eup %2184  ;;  %2192 = vrcp.f32 %v1469_v21  ;;  %v1490_v29 = vmul.f32 %v2183_v34, %v1486_v61 }
 0x339   : > { %2194 = vtanh.f32 %v1492_v30  ;;  %v1489_v33 = vmul.f32 %v2185_v39, %v1485_v37 }
 0x33a   : > { %2196 = vtanh.f32 %v1491_v10  ;;  %v1494_v32 = vadd.f32 %v1490_v29, %v2617_v52 }
 0x33b   : > { %v1493_v27 = vadd.f32 %v1489_v33, %v2621_v59  ;;  %v2187_v40 = vpop.eup %2186 }
 0x33c   : > { %2198 = vtanh.f32 %v1494_v32  ;;  %v2189_v43 = vpop.eup %2188  ;;  %v1500_v49 = vsub.f32 1.0, %v2187_v40  ;;  %v1508_v55 = vmul.f32 %v2187_v40, %v2701_v54 }
 0x33d   : > { %2200 = vtanh.f32 %v1493_v27  ;;  %v1499_v25 = vsub.f32 1.0, %v2189_v43  ;;  %v1507_v4 = vmul.f32 %v2189_v43, %v2706_v12 }
 0x33f   : > { %v2191_v45 = vpop.eup %2190 }
 0x340   : > { %v1502_v52 = vsub.f32 1.0, %v2191_v45  ;;  %v1510_v9 = vmul.f32 %v2191_v45, %v2712_v57 }
 0x342   : > { %v2193_v41 = vpop.eup %2192 }
 0x343   : > { %v2195_v51 = vpop.eup %2194  ;;  %v1501_v60 = vsub.f32 1.0, %v2193_v41  ;;  %v1509_v0 = vmul.f32 %v2193_v41, %v2716_v31 }
 0x344   : > { %v2197_v5 = vpop.eup %2196  ;;  %v1504_v7 = vmul.f32 %v2195_v51, %v1500_v49 }
 0x345   : > { %v1503_v59 = vmul.f32 %v2197_v5, %v1499_v25 }
 0x346   : > { %v2199_v58 = vpop.eup %2198  ;;  %v1512_v62 = vadd.f32 %v1508_v55, %v1504_v7 }
 0x347   : > { %v2201_v6 = vpop.eup %2200  ;;  %v1511_v2 = vadd.f32 %v1507_v4, %v1503_v59  ;;  %v1506_v13 = vmul.f32 %v2199_v58, %v1502_v52  ;;  %1532 = sbr.rel (%p1725_p8) target bundleno = 846 (0x34e), region = 44 }
 0x348   : > { %v1521_v16 = vsel %vm1519_vm4, %v1512_v62, %v2701_v54  ;;  %v1505_v14 = vmul.f32 %v2201_v6, %v1501_v60 }
 0x349   : > { %1526 = vst.msk [vmem:[#allocation2 + $0x8] sm:$0xff] %vm1524_vm5, %v1521_v16  ;;  %v1520_v1 = vsel %vm1519_vm4, %v1511_v2, %v2706_v12  ;;  %v1514_v18 = vadd.f32 %v1510_v9, %v1506_v13  ;;  %1534 = vst.msk [vmem:[%s2807_s4 + $0x8] sm:$0xff] (!%p1725_p8), %vm1524_vm5, %v1521_v16 }
 0x34a   : > { %1525 = vst.msk [vmem:[#allocation2] sm:$0xff] %vm1524_vm5, %v1520_v1  ;;  %v1513_v19 = vadd.f32 %v1509_v0, %v1505_v14  ;;  %1533 = vst.msk [vmem:[%s2807_s4] sm:$0xff] (!%p1725_p8), %vm1524_vm5, %v1520_v1 }
 0x34b   : > { %v1523_v63 = vsel %vm1519_vm4, %v1514_v18, %v2712_v57 }
 0x34c   : > { %1528 = vst.msk [vmem:[#allocation2 + $0x18] sm:$0xff] %vm1524_vm5, %v1523_v63  ;;  %v1522_v24 = vsel %vm1519_vm4, %v1513_v19, %v2716_v31  ;;  %1536 = vst.msk [vmem:[%s2807_s4 + $0x18] sm:$0xff] (!%p1725_p8), %vm1524_vm5, %v1523_v63 }
 0x34d   : > { %1527 = vst.msk [vmem:[#allocation2 + $0x10] sm:$0xff] %vm1524_vm5, %v1522_v24  ;;  %1535 = vst.msk [vmem:[%s2807_s4 + $0x10] sm:$0xff] (!%p1725_p8), %vm1524_vm5, %v1522_v24 }
 0x34e PF: > { %s14_s17 = sadd.s32 1, %s2224_s17   ;;  %s2810_s15 = smov %s2220_s16 }
 0x34f   : > { %p11_p9 = scmp.ge.s32.totalorder %s14_s17, 5   ;;  %s2811_s16 = smov %s2813_s18 }
 0x351   :  { %13 = sbr.rel (!%p11_p9) target bundleno = 2 (0x2), region = 79 }

</bundles_post_ra>
